<compile_context>
chip_gen: v5e
topology: v5e:2x2
jax: 0.10.0
libtpu: 0.0.40
codegen_flags: <defaults>
</compile_context>

<pallas_src>
import jax
import jax.numpy as jnp
from jax.experimental import pallas as pl
from jax.experimental.pallas import tpu as pltpu


def _combine_kernel(x_ref, wsel_ref, o_ref):
    # x_ref:    (TB, HC)  lane-dense batch slab (streamed)
    # wsel_ref: (HC, C)   clamped weight folded into a selection matrix (resident)
    # o_ref:    (TB, C)   per-row combined criteria
    o_ref[...] = jnp.dot(
        x_ref[...], wsel_ref[...], preferred_element_type=jnp.float32
    ).astype(o_ref.dtype)


def criterion_layer_combine(x, weight, min_weight=0.0, block_b=8192):
    """x: (B, H, C), weight: (H, C) -> (B, C) = (x * clamp(weight, min_weight)).sum(1)."""
    B, H, C = x.shape
    assert weight.shape == (H, C)
    HC = H * C
    itemsize = jnp.dtype(x.dtype).itemsize

    # Lane-dense input layout (row-major flatten, flat index = h*C + c).
    x_flat = x.reshape(B, HC)

    # Fold the clamp into the matmul operand (built once; HC*C elements, negligible):
    #   W_sel[h*C + c, j] = max(weight[h, c], min_weight)  if c == j else 0
    # so  o[b, j] = sum_h x[b, h, j] * max(weight[h, j], min_weight).
    w_clamped = jnp.maximum(weight, min_weight).astype(x.dtype)      # (H, C)
    eye = jnp.eye(C, dtype=x.dtype)                                  # (C, C)
    w_sel = (w_clamped[:, :, None] * eye[None, :, :]).reshape(HC, C)  # (HC, C)

    # Batch blocking: target ~4 MiB of x per step (double-buffered), budgeted
    # against the lane-padded (TB, 128) output tile.  For large HC this shrinks
    # TB automatically so the block stays at the HBM roofline without blowing VMEM.
    target_rows = max(8, (4 * 1024 * 1024) // (HC * itemsize))
    TB = min(block_b, target_rows)
    TB = max(8, (TB // 8) * 8)
    if B <= TB:
        TB = B                       # single whole-array block (full-dim is allowed)
    num_blocks = pl.cdiv(B, TB)      # partial edge block: OOB writes are masked

    out = pl.pallas_call(
        _combine_kernel,
        out_shape=jax.ShapeDtypeStruct((B, C), x.dtype),
        grid_spec=pltpu.PrefetchScalarGridSpec(
            num_scalar_prefetch=0,
            grid=(num_blocks,),
            in_specs=[
                pl.BlockSpec((TB, HC), lambda b: (b, 0)),  # streaming x slab
                pl.BlockSpec((HC, C), lambda b: (0, 0)),   # weight operand, reused
            ],
            out_specs=pl.BlockSpec((TB, C), lambda b: (b, 0)),
        ),
        compiler_params=pltpu.CompilerParams(
            dimension_semantics=("parallel",),
            vmem_limit_bytes=32 * 1024 * 1024,
        ),
        cost_estimate=pl.CostEstimate(
            flops=2 * B * HC * C,
            transcendentals=0,
            bytes_accessed=(B * HC + B * C + HC * C) * itemsize,
        ),
    )(x_flat, w_sel)
    return out


def init_weight(key, hidden_nr, criteria_nr):
    """Deterministic reproduction of reset_parameters(): U(0.2, 1.0) / sum."""
    w = jax.random.uniform(key, (hidden_nr, criteria_nr),
                           minval=0.2, maxval=1.0, dtype=jnp.float32)
    return w / jnp.sum(w)


if __name__ == "__main__":
    # Small shapes consistent with the module: batch=2, hidden_nr=32, criteria_nr=4.
    B, H, C = 2, 32, 4
    min_weight = 0.0

    key = jax.random.PRNGKey(0)
    k_w, k_x = jax.random.split(key)

    weight = init_weight(k_w, H, C)
    x = jax.random.normal(k_x, (B, H, C), dtype=jnp.float32)

    out = criterion_layer_combine(x, weight, min_weight)
    out = jax.block_until_ready(out)

    # Pure-JAX reference of the exact PyTorch semantics.
    ref = jnp.sum(x * jnp.maximum(weight, min_weight)[None, :, :], axis=1)
    assert out.shape == (B, C)
    assert jnp.allclose(out, ref, atol=1e-5, rtol=1e-5)

    print("KERNEL_OK")
</pallas_src>

<mosaic_0001>
module attributes {stable_mosaic.version = 11 : i64} {
  func.func @_combine_kernel(%arg0: i32, %arg1: memref<2x128xf32, #tpu.memory_space<vmem>>, %arg2: memref<128x4xf32, #tpu.memory_space<vmem>>, %arg3: memref<2x4xf32, #tpu.memory_space<vmem>>) attributes {dimension_semantics = [#tpu.dimension_semantics<parallel>], iteration_bounds = array<i64: 1>, scalar_prefetch = 0 : i64, scratch_operands = 0 : i64, tpu.core_type = #tpu.core_type<tc>, window_params = [{transform_indices = @transform_0, window_bounds = array<i64: 2, 128>}, {pipeline_mode = #tpu.pipeline_mode<synchronous>, transform_indices = @transform_1, window_bounds = array<i64: 128, 4>}, {transform_indices = @transform_2, window_bounds = array<i64: 2, 4>}]} {
    %c0 = arith.constant 0 : index
    %c0_0 = arith.constant 0 : index
    %0 = vector.load %arg1[%c0, %c0_0] : memref<2x128xf32, #tpu.memory_space<vmem>>, vector<2x128xf32>
    %c0_1 = arith.constant 0 : index
    %c0_2 = arith.constant 0 : index
    %1 = vector.load %arg2[%c0_1, %c0_2] : memref<128x4xf32, #tpu.memory_space<vmem>>, vector<128x4xf32>
    %cst = arith.constant dense<0.000000e+00> : vector<2x4xf32>
    %2 = tpu.matmul %0, %1, %cst {dimension_numbers = #tpu.dot_dimension_numbers<[1], [0], [0], [1], [0, 0, 1, 1], [], []>} : vector<2x128xf32>, vector<128x4xf32>, vector<2x4xf32> -> vector<2x4xf32>
    %c0_3 = arith.constant 0 : index
    %c0_4 = arith.constant 0 : index
    %3 = vector.load %arg3[%c0_3, %c0_4] : memref<2x4xf32, #tpu.memory_space<vmem>>, vector<2x4xf32>
    tpu.vector_store %arg3[%c0_3, %c0_4], %2 {strides = array<i32>} : memref<2x4xf32, #tpu.memory_space<vmem>>, vector<2x4xf32>,
    return
  }
  func.func @transform_0(%arg0: i32) -> (i32, i32) {
    %c0_i32 = arith.constant 0 : i32
    %c0_i32_0 = arith.constant 0 : i32
    return %arg0, %c0_i32 : i32, i32
  }
  func.func @transform_1(%arg0: i32) -> (i32, i32) {
    %c0_i32 = arith.constant 0 : i32
    %c0_i32_0 = arith.constant 0 : i32
    %c0_i32_1 = arith.constant 0 : i32
    return %c0_i32, %c0_i32_0 : i32, i32
  }
  func.func @transform_2(%arg0: i32) -> (i32, i32) {
    %c0_i32 = arith.constant 0 : i32
    %c0_i32_0 = arith.constant 0 : i32
    return %arg0, %c0_i32 : i32, i32
  }
}

</mosaic_0001>

<bundles_post_ra>
// kernel: tpu_custom_call.1
= control target key start
LH: loop header
LB: loop body
LE: loop exit
PB: predicated region body
PF: predicated region fallthrough
CT: control target
= control target key end

     0   :  { %s164_s0 = inlined_call_operand.vmem [shape: f32[2,128], index: 0, kind: input, shape index: {}]   ;;  %s165_s1 = inlined_call_operand.vmem [shape: f32[128,4], index: 1, kind: input, shape index: {}]   ;;  %s166_s2 = inlined_call_operand.hbm [shape: f32[2,4], index: 2, kind: output, shape index: {}]  }
   0x1   :  { %v28_v0 = vld [vmem:[%s165_s1 + $0x78] sm:$0xff]  ;;  %v27_v1 = vld [vmem:[%s165_s1 + $0x70] sm:$0xff]  ;;  %v26_v2 = vld [vmem:[%s165_s1 + $0x68] sm:$0xff] }
   0x2   :  { %29 = vmatpush.msra.mxu0 %v28_v0  ;;  %v25_v3 = vld [vmem:[%s165_s1 + $0x60] sm:$0xff] }
   0x4   :  { %30 = vmatpush.msra.mxu0 %v27_v1 }
   0x6   :  { %31 = vmatpush.msra.mxu0 %v26_v2 }
   0x7   :  { %7 = vsyncpa [#allocation3], 0  ;;  %v24_v4 = vld [vmem:[%s165_s1 + $0x58] sm:$0xff]  ;;  %v23_v5 = vld [vmem:[%s165_s1 + $0x50] sm:$0xff]  ;;  %s94_s15 = smov [#allocation2]   ;;  %s58_s19 = sshll.u32 %s166_s2, 4  ;;  %s59_s19 = int_to_ptr.hbm [resolvable:$true] %s58_s19 }
   0x8   :  { %32 = vmatpush.msra.mxu0 %v25_v3  ;;  %v22_v6 = vld [vmem:[%s165_s1 + $0x48] sm:$0xff]  ;;  %v21_v7 = vld [vmem:[%s165_s1 + $0x40] sm:$0xff]  ;;  %v20_v8 = vld [vmem:[%s165_s1 + $0x38] sm:$0xff]  ;;  %s56_s16 = sshll.u32 %s94_s15, 4  ;;  %vm49_vm0 = vcmask 25600   ;;  %s57_s16 = int_to_ptr.vmem [resolvable:$true] %s56_s16 }
   0x9   :  { %v19_v9 = vld [vmem:[%s165_s1 + $0x30] sm:$0xff]  ;;  %v18_v10 = vld [vmem:[%s165_s1 + $0x28] sm:$0xff]  ;;  %v17_v11 = vld [vmem:[%s165_s1 + $0x20] sm:$0xff] }
   0xa   :  { %33 = vmatpush.msra.mxu0 %v24_v4  ;;  %v16_v12 = vld [vmem:[%s165_s1 + $0x18] sm:$0xff]  ;;  %v15_v13 = vld [vmem:[%s165_s1 + $0x10] sm:$0xff]  ;;  %v14_v14 = vld [vmem:[%s165_s1 + $0x8] sm:$0xff] }
   0xb   :  { %v13_v15 = vld [vmem:[%s165_s1] sm:$0xff] }
   0xc   :  { %34 = vmatpush.msra.mxu0 %v23_v5  ;;  %v12_v16 = vld [vmem:[%s164_s0] sm:$0x3] }
   0xe   :  { %35 = vmatpush.msra.mxu0 %v22_v6 }
  0x10   :  { %36 = vmatpush.msra.mxu0 %v21_v7 }
  0x12   :  { %37 = vmatpush.msra.mxu0 %v20_v8 }
  0x14   :  { %38 = vmatpush.msra.mxu0 %v19_v9 }
  0x16   :  { %39 = vmatpush.msra.mxu0 %v18_v10 }
  0x18   :  { %40 = vmatpush.msra.mxu0 %v17_v11 }
  0x1a   :  { %41 = vmatpush.msra.mxu0 %v16_v12 }
  0x1c   :  { %42 = vmatpush.msra.mxu0 %v15_v13 }
  0x1e   :  { %43 = vmatpush.msra.mxu0 %v14_v14 }
  0x20   :  { %44 = vmatpush.msra.mxu0 %v13_v15 }
  0x21   :  { %45 = vmatmul.f32.vlgmr.msra.gmra.mxu0 %v12_v16 }
  0x9e   :  { %v46_v17 = vpop.f32.mrf.mxu0 }
  0x9f   :  { %50 = vst.msk [vmem:[#allocation2] sm:$0x3] %vm49_vm0, %v46_v17 }
  0xa0   :  { %61 = dma.vmem_to_hbm [thread:$0]  %s57_s16, 32, %s59_s19, [#allocation3]  }
  0xa1   :  { %92 = dma.done.wait [#allocation3], 32  }
  0xa2   :  { %93 = vsyncadd [#allocation3], 4294967264 }
  0xa3   :  { %66 = vsyncpa [#allocation3], 1 }

</bundles_post_ra>
